<compile_context>
chip_gen: v6e
topology: v6e:2x2x1
jax: 0.10.0
libtpu: 0.0.40
codegen_flags: <defaults>
</compile_context>

<pallas_src>
import functools

import jax
import jax.numpy as jnp
from jax.experimental import pallas as pl
from jax.experimental.pallas import tpu as pltpu

NUM_CLASSES = 2
NEG_SLOPE = 0.01            # nn.LeakyReLU default negative_slope
LANE = 128                  # lane-dense padded output width
SUBLANE = 8
SLAB_VMEM_BYTES = 4 << 20   # stage full encoder_outputs in VMEM below this size


def _leaky_relu(x):
    return jnp.where(x >= 0, x, NEG_SLOPE * x)


def _run_mlp(x_ref, w1_ref, b1_ref, w2_ref, b2_ref, w3_ref, b3_ref, out_ref,
             wait1=None, wait2=None, wait3=None):
    """3-layer LeakyReLU MLP; optional wait hooks let DMAs hide under matmuls."""
    # TODO(synk): nn.Dropout treated as identity (inference/eval mode); a training
    # variant would use pltpu.prng_seed / pltpu.prng_random_bits.
    if wait1 is not None:
        wait1()
    x = x_ref[...].astype(jnp.bfloat16)
    h1 = _leaky_relu(
        jnp.dot(x, w1_ref[...], preferred_element_type=jnp.float32) + b1_ref[...])
    if wait2 is not None:
        wait2()
    h2 = _leaky_relu(
        jnp.dot(h1.astype(jnp.bfloat16), w2_ref[...],
                preferred_element_type=jnp.float32) + b2_ref[...])
    if wait3 is not None:
        wait3()
    logits = (jnp.dot(h2.astype(jnp.bfloat16), w3_ref[...],
                      preferred_element_type=jnp.float32) + b3_ref[...])
    out_ref[...] = logits.astype(out_ref.dtype)   # full 128-lane unmasked store


def _clf_kernel_slab(lens_ref,                # SMEM (B,) int32
                     enc_ref,                 # VMEM (S, B, H) native dtype
                     w1_ref, b1_ref,          # VMEM (H, H) bf16, (1, H) f32
                     w2_ref, b2_ref,          # VMEM (H, H/2) bf16, (1, H/2) f32
                     w3_ref, b3_ref,          # VMEM (H/2, LANE) bf16, (1, LANE) f32
                     out_ref,                 # VMEM (B_pad, LANE) f32
                     x_ref):                  # VMEM scratch (B_pad, H) bf16
    B = lens_ref.shape[0]
    B_pad, H = x_ref.shape

    # Zero the sublane-padding rows (sliced away by the wrapper anyway).
    if B_pad > B:
        x_ref[pl.ds(B, B_pad - B), :] = jnp.zeros((B_pad - B, H), x_ref.dtype)

    # Gather last-valid-timestep rows with dynamic Ref indexing (slab is VMEM
    # resident; no per-row DMA descriptors needed at this size).
    for b in range(B):
        t = jnp.maximum(lens_ref[b] - 1, 0)      # clamp: lengths==0 can't go OOB
        x_ref[pl.ds(b, 1), :] = enc_ref[t, pl.ds(b, 1), :].astype(x_ref.dtype)

    _run_mlp(x_ref, w1_ref, b1_ref, w2_ref, b2_ref, w3_ref, b3_ref, out_ref)


def _clf_kernel_gather(lens_ref,              # SMEM (B,) int32
                       enc_hbm,               # HBM/ANY (S, B, H) — never fully loaded
                       w1_hbm, b1_hbm,        # HBM/ANY weights (bf16 / f32)
                       w2_hbm, b2_hbm,
                       w3_hbm, b3_hbm,
                       out_ref,               # VMEM (B_pad, LANE) f32
                       x_ref,                 # VMEM scratch (B_pad, H) native dtype
                       w1_v, b1_v, w2_v, b2_v, w3_v, b3_v,   # VMEM weight scratch
                       row_sems, w_sems):     # DMA semaphores (B,), (6,)
    B = lens_ref.shape[0]
    B_pad, H = x_ref.shape

    # Issue ALL DMAs (weights + per-row gathers) before waiting on anything so
    # weight transfer hides under the gather round-trip.
    w_copies = []
    for i, (src, dst) in enumerate([(w1_hbm, w1_v), (b1_hbm, b1_v),
                                    (w2_hbm, w2_v), (b2_hbm, b2_v),
                                    (w3_hbm, w3_v), (b3_hbm, b3_v)]):
        cp = pltpu.make_async_copy(src, dst, w_sems.at[i])
        cp.start()
        w_copies.append(cp)

    # TODO(synk): for large B, replace the unrolled gather with a bounded
    # in-flight window (fixed semaphore pool + lax.fori_loop).
    row_copies = []
    for b in range(B):
        t = jnp.maximum(lens_ref[b] - 1, 0)      # clamp: lengths==0 can't go OOB
        cp = pltpu.make_async_copy(
            enc_hbm.at[t, pl.ds(b, 1), :],       # (1, H) row in HBM
            x_ref.at[pl.ds(b, 1), :],            # (1, H) row in VMEM
            row_sems.at[b])
        cp.start()
        row_copies.append(cp)

    # Zero the padding rows while the DMAs are in flight (off the critical path).
    if B_pad > B:
        x_ref[pl.ds(B, B_pad - B), :] = jnp.zeros((B_pad - B, H), x_ref.dtype)

    def wait1():
        for cp in row_copies:
            cp.wait()
        w_copies[0].wait()
        w_copies[1].wait()

    def wait2():
        w_copies[2].wait()
        w_copies[3].wait()

    def wait3():
        w_copies[4].wait()
        w_copies[5].wait()

    _run_mlp(x_ref, w1_v, b1_v, w2_v, b2_v, w3_v, b3_v, out_ref,
             wait1=wait1, wait2=wait2, wait3=wait3)


def prepare_params(params):
    """One-time weight prep (do NOT call per step): bf16 weights, f32 (1, out)
    biases, final layer pre-padded to a lane-dense 128-wide output."""
    w1, b1, w2, b2, w3, b3 = params
    w3p = jnp.pad(w3, ((0, 0), (0, LANE - w3.shape[1])))
    b3p = jnp.pad(b3.reshape(1, -1), ((0, 0), (0, LANE - b3.size)))
    return (w1.astype(jnp.bfloat16), b1.reshape(1, -1).astype(jnp.float32),
            w2.astype(jnp.bfloat16), b2.reshape(1, -1).astype(jnp.float32),
            w3p.astype(jnp.bfloat16), b3p.astype(jnp.float32))


@functools.partial(jax.jit, static_argnames=("use_slab",))
def single_target_clf(encoder_outputs, encoder_input_lengths, prepped, use_slab=None):
    """Pallas equivalent of the CRAFT classifier head (dropout = identity).

    `prepped` must come from `prepare_params` (persistent bf16 / pre-padded)."""
    S, B, H = encoder_outputs.shape
    w1, b1, w2, b2, w3p, b3p = prepped
    # Lane alignment: H and H//2 must be multiples of 128.
    assert H % (2 * LANE) == 0, "hidden_size must be a multiple of 256"
    assert w1.shape == (H, H) and w2.shape == (H, H // 2) and w3p.shape == (H // 2, LANE)

    B_pad = max(SUBLANE, -(-B // SUBLANE) * SUBLANE)
    if use_slab is None:
        use_slab = S * B * H * encoder_outputs.dtype.itemsize <= SLAB_VMEM_BYTES

    lengths = encoder_input_lengths.astype(jnp.int32)
    out_shape = jax.ShapeDtypeStruct((B_pad, LANE), jnp.float32)
    vmem = pl.BlockSpec(memory_space=pltpu.MemorySpace.VMEM)
    smem = pl.BlockSpec(memory_space=pltpu.MemorySpace.SMEM)
    hbm = pl.BlockSpec(memory_space=pl.ANY)

    if use_slab:
        out_padded = pl.pallas_call(
            _clf_kernel_slab,
            out_shape=out_shape,
            in_specs=[smem, vmem, vmem, vmem, vmem, vmem, vmem, vmem],
            out_specs=vmem,
            scratch_shapes=[pltpu.VMEM((B_pad, H), jnp.bfloat16)],
        )(lengths, encoder_outputs, w1, b1, w2, b2, w3p, b3p)
    else:
        out_padded = pl.pallas_call(
            _clf_kernel_gather,
            out_shape=out_shape,
            in_specs=[smem, hbm, hbm, hbm, hbm, hbm, hbm, hbm],
            out_specs=vmem,
            scratch_shapes=[
                pltpu.VMEM((B_pad, H), encoder_outputs.dtype),  # gathered rows
                pltpu.VMEM((H, H), jnp.bfloat16),               # w1
                pltpu.VMEM((1, H), jnp.float32),                # b1
                pltpu.VMEM((H, H // 2), jnp.bfloat16),          # w2
                pltpu.VMEM((1, H // 2), jnp.float32),           # b2
                pltpu.VMEM((H // 2, LANE), jnp.bfloat16),       # w3 (padded)
                pltpu.VMEM((1, LANE), jnp.float32),             # b3 (padded)
                pltpu.SemaphoreType.DMA((B,)),                  # row gather sems
                pltpu.SemaphoreType.DMA((6,)),                  # weight sems
            ],
        )(lengths, encoder_outputs, w1, b1, w2, b2, w3p, b3p)

    return out_padded[:B, :NUM_CLASSES]


def init_params(key, hidden_size):
    """Deterministic PyTorch-Linear-style init. Weights stored as (in, out)."""
    h2 = hidden_size // 2

    def linear(key, fan_in, fan_out):
        kw, kb = jax.random.split(key)
        bound = 1.0 / jnp.sqrt(fan_in)
        w = jax.random.uniform(kw, (fan_in, fan_out), jnp.float32, -bound, bound)
        b = jax.random.uniform(kb, (1, fan_out), jnp.float32, -bound, bound)
        return w, b

    k1, k2, k3 = jax.random.split(key, 3)
    w1, b1 = linear(k1, hidden_size, hidden_size)
    w2, b2 = linear(k2, hidden_size, h2)
    w3, b3 = linear(k3, h2, NUM_CLASSES)
    return (w1, b1, w2, b2, w3, b3)


def _reference(encoder_outputs, lengths, params):
    w1, b1, w2, b2, w3, b3 = params
    S, B, H = encoder_outputs.shape
    last = encoder_outputs[lengths - 1, jnp.arange(B), :]   # (B, H)
    h1 = _leaky_relu(last @ w1 + b1)
    h2 = _leaky_relu(h1 @ w2 + b2)
    return h2 @ w3 + b3


if __name__ == "__main__":
    hidden_size = 256   # multiple of 256 so H and H//2 are lane-aligned
    batch = 4
    max_seq = 10

    key = jax.random.PRNGKey(0)
    k_enc, k_len, k_par = jax.random.split(key, 3)

    encoder_outputs = jax.random.normal(
        k_enc, (max_seq, batch, hidden_size), jnp.float32
    )
    encoder_input_lengths = jax.random.randint(
        k_len, (batch,), 1, max_seq + 1, jnp.int32
    )
    params = init_params(k_par, hidden_size)
    # One-time weight prep (bf16 + lane padding) — outside the per-call hot path.
    prepped = jax.block_until_ready(prepare_params(params))

    ref = _reference(encoder_outputs, encoder_input_lengths, params)

    # Path 1: small slab staged fully in VMEM (auto-selected at these shapes).
    logits_slab = jax.block_until_ready(
        single_target_clf(encoder_outputs, encoder_input_lengths, prepped,
                          use_slab=True))
    # Path 2: HBM-resident encoder, per-row gather overlapped with weight DMAs.
    logits_gather = jax.block_until_ready(
        single_target_clf(encoder_outputs, encoder_input_lengths, prepped,
                          use_slab=False))

    assert logits_slab.shape == (batch, NUM_CLASSES)
    assert logits_gather.shape == (batch, NUM_CLASSES)
    # Kernel uses bf16 MXU operands with f32 accumulation; compare against the
    # pure-f32 reference with a tolerance that covers bf16 rounding.
    assert jnp.allclose(logits_slab, ref, atol=3e-2, rtol=3e-2), (logits_slab, ref)
    assert jnp.allclose(logits_gather, ref, atol=3e-2, rtol=3e-2), (logits_gather, ref)

    print("KERNEL_OK")
</pallas_src>

<mosaic_0001>
module attributes {stable_mosaic.version = 11 : i64} {
  func.func @_clf_kernel_slab(%arg0: memref<4xi32, #tpu.memory_space<smem>>, %arg1: memref<10x4x256xf32, #tpu.memory_space<vmem>>, %arg2: memref<256x256xbf16, #tpu.memory_space<vmem>>, %arg3: memref<1x256xf32, #tpu.memory_space<vmem>>, %arg4: memref<256x128xbf16, #tpu.memory_space<vmem>>, %arg5: memref<1x128xf32, #tpu.memory_space<vmem>>, %arg6: memref<128x128xbf16, #tpu.memory_space<vmem>>, %arg7: memref<1x128xf32, #tpu.memory_space<vmem>>, %arg8: memref<8x128xf32, #tpu.memory_space<vmem>>, %arg9: memref<8x256xbf16, #tpu.memory_space<vmem>>) attributes {dimension_semantics = [], scalar_prefetch = 0 : i64, scratch_operands = 1 : i64, tpu.core_type = #tpu.core_type<tc>} {
    %cst = arith.constant 0.000000e+00 : bf16
    %0 = vector.broadcast %cst : bf16 to vector<4x256xbf16>
    %c4 = arith.constant 4 : index
    %c0 = arith.constant 0 : index
    %1 = vector.load %arg9[%c4, %c0] : memref<8x256xbf16, #tpu.memory_space<vmem>>, vector<4x256xbf16>
    tpu.vector_store %arg9[%c4, %c0], %0 {strides = array<i32>} : memref<8x256xbf16, #tpu.memory_space<vmem>>, vector<4x256xbf16>,
    %c0_0 = arith.constant 0 : index
    %2 = memref.load %arg0[%c0_0] : memref<4xi32, #tpu.memory_space<smem>>
    %c1_i32 = arith.constant 1 : i32
    %3 = arith.subi %2, %c1_i32 : i32
    %c0_i32 = arith.constant 0 : i32
    %4 = arith.maxsi %3, %c0_i32 : i32
    %5 = arith.index_cast %4 : i32 to index
    %c0_1 = arith.constant 0 : index
    %c0_2 = arith.constant 0 : index
    %6 = vector.load %arg1[%5, %c0_1, %c0_2] : memref<10x4x256xf32, #tpu.memory_space<vmem>>, vector<1x1x256xf32>
    %7 = vector.shape_cast %6 : vector<1x1x256xf32> to vector<1x256xf32>
    %8 = arith.truncf %7 : vector<1x256xf32> to vector<1x256xbf16>
    %c0_3 = arith.constant 0 : index
    %c0_4 = arith.constant 0 : index
    %9 = vector.load %arg9[%c0_3, %c0_4] : memref<8x256xbf16, #tpu.memory_space<vmem>>, vector<1x256xbf16>
    tpu.vector_store %arg9[%c0_3, %c0_4], %8 {strides = array<i32>} : memref<8x256xbf16, #tpu.memory_space<vmem>>, vector<1x256xbf16>,
    %c1 = arith.constant 1 : index
    %10 = memref.load %arg0[%c1] : memref<4xi32, #tpu.memory_space<smem>>
    %c1_i32_5 = arith.constant 1 : i32
    %11 = arith.subi %10, %c1_i32_5 : i32
    %c0_i32_6 = arith.constant 0 : i32
    %12 = arith.maxsi %11, %c0_i32_6 : i32
    %13 = arith.index_cast %12 : i32 to index
    %c1_7 = arith.constant 1 : index
    %c0_8 = arith.constant 0 : index
    %14 = vector.load %arg1[%13, %c1_7, %c0_8] : memref<10x4x256xf32, #tpu.memory_space<vmem>>, vector<1x1x256xf32>
    %15 = vector.shape_cast %14 : vector<1x1x256xf32> to vector<1x256xf32>
    %16 = arith.truncf %15 : vector<1x256xf32> to vector<1x256xbf16>
    %c1_9 = arith.constant 1 : index
    %c0_10 = arith.constant 0 : index
    %17 = vector.load %arg9[%c1_9, %c0_10] : memref<8x256xbf16, #tpu.memory_space<vmem>>, vector<1x256xbf16>
    tpu.vector_store %arg9[%c1_9, %c0_10], %16 {strides = array<i32>} : memref<8x256xbf16, #tpu.memory_space<vmem>>, vector<1x256xbf16>,
    %c2 = arith.constant 2 : index
    %18 = memref.load %arg0[%c2] : memref<4xi32, #tpu.memory_space<smem>>
    %c1_i32_11 = arith.constant 1 : i32
    %19 = arith.subi %18, %c1_i32_11 : i32
    %c0_i32_12 = arith.constant 0 : i32
    %20 = arith.maxsi %19, %c0_i32_12 : i32
    %21 = arith.index_cast %20 : i32 to index
    %c2_13 = arith.constant 2 : index
    %c0_14 = arith.constant 0 : index
    %22 = vector.load %arg1[%21, %c2_13, %c0_14] : memref<10x4x256xf32, #tpu.memory_space<vmem>>, vector<1x1x256xf32>
    %23 = vector.shape_cast %22 : vector<1x1x256xf32> to vector<1x256xf32>
    %24 = arith.truncf %23 : vector<1x256xf32> to vector<1x256xbf16>
    %c2_15 = arith.constant 2 : index
    %c0_16 = arith.constant 0 : index
    %25 = vector.load %arg9[%c2_15, %c0_16] : memref<8x256xbf16, #tpu.memory_space<vmem>>, vector<1x256xbf16>
    tpu.vector_store %arg9[%c2_15, %c0_16], %24 {strides = array<i32>} : memref<8x256xbf16, #tpu.memory_space<vmem>>, vector<1x256xbf16>,
    %c3 = arith.constant 3 : index
    %26 = memref.load %arg0[%c3] : memref<4xi32, #tpu.memory_space<smem>>
    %c1_i32_17 = arith.constant 1 : i32
    %27 = arith.subi %26, %c1_i32_17 : i32
    %c0_i32_18 = arith.constant 0 : i32
    %28 = arith.maxsi %27, %c0_i32_18 : i32
    %29 = arith.index_cast %28 : i32 to index
    %c3_19 = arith.constant 3 : index
    %c0_20 = arith.constant 0 : index
    %30 = vector.load %arg1[%29, %c3_19, %c0_20] : memref<10x4x256xf32, #tpu.memory_space<vmem>>, vector<1x1x256xf32>
    %31 = vector.shape_cast %30 : vector<1x1x256xf32> to vector<1x256xf32>
    %32 = arith.truncf %31 : vector<1x256xf32> to vector<1x256xbf16>
    %c3_21 = arith.constant 3 : index
    %c0_22 = arith.constant 0 : index
    %33 = vector.load %arg9[%c3_21, %c0_22] : memref<8x256xbf16, #tpu.memory_space<vmem>>, vector<1x256xbf16>
    tpu.vector_store %arg9[%c3_21, %c0_22], %32 {strides = array<i32>} : memref<8x256xbf16, #tpu.memory_space<vmem>>, vector<1x256xbf16>,
    %c0_23 = arith.constant 0 : index
    %c0_24 = arith.constant 0 : index
    %34 = vector.load %arg9[%c0_23, %c0_24] : memref<8x256xbf16, #tpu.memory_space<vmem>>, vector<8x256xbf16>
    %c0_25 = arith.constant 0 : index
    %c0_26 = arith.constant 0 : index
    %35 = vector.load %arg2[%c0_25, %c0_26] : memref<256x256xbf16, #tpu.memory_space<vmem>>, vector<256x256xbf16>
    %cst_27 = arith.constant dense<0.000000e+00> : vector<8x256xf32>
    %36 = tpu.matmul %34, %35, %cst_27 {dimension_numbers = #tpu.dot_dimension_numbers<[1], [0], [0], [1], [0, 0, 1, 1], [], []>} : vector<8x256xbf16>, vector<256x256xbf16>, vector<8x256xf32> -> vector<8x256xf32>
    %c0_28 = arith.constant 0 : index
    %c0_29 = arith.constant 0 : index
    %37 = vector.load %arg3[%c0_28, %c0_29] : memref<1x256xf32, #tpu.memory_space<vmem>>, vector<1x256xf32>
    %38 = vector.broadcast %37 : vector<1x256xf32> to vector<8x256xf32>
    %39 = arith.addf %36, %38 : vector<8x256xf32>
    %cst_30 = arith.constant 0.000000e+00 : f32
    %40 = vector.broadcast %cst_30 : f32 to vector<8x256xf32>
    %41 = arith.cmpf oge, %39, %40 : vector<8x256xf32>
    %cst_31 = arith.constant 0.00999999977 : f32
    %42 = vector.broadcast %cst_31 : f32 to vector<8x256xf32>
    %43 = arith.mulf %42, %39 : vector<8x256xf32>
    %44 = arith.select %41, %39, %43 : vector<8x256xi1>, vector<8x256xf32>
    %45 = arith.truncf %44 : vector<8x256xf32> to vector<8x256xbf16>
    %c0_32 = arith.constant 0 : index
    %c0_33 = arith.constant 0 : index
    %46 = vector.load %arg4[%c0_32, %c0_33] : memref<256x128xbf16, #tpu.memory_space<vmem>>, vector<256x128xbf16>
    %cst_34 = arith.constant dense<0.000000e+00> : vector<8x128xf32>
    %47 = tpu.matmul %45, %46, %cst_34 {dimension_numbers = #tpu.dot_dimension_numbers<[1], [0], [0], [1], [0, 0, 1, 1], [], []>} : vector<8x256xbf16>, vector<256x128xbf16>, vector<8x128xf32> -> vector<8x128xf32>
    %c0_35 = arith.constant 0 : index
    %c0_36 = arith.constant 0 : index
    %48 = vector.load %arg5[%c0_35, %c0_36] : memref<1x128xf32, #tpu.memory_space<vmem>>, vector<1x128xf32>
    %49 = vector.broadcast %48 : vector<1x128xf32> to vector<8x128xf32>
    %50 = arith.addf %47, %49 : vector<8x128xf32>
    %cst_37 = arith.constant 0.000000e+00 : f32
    %51 = vector.broadcast %cst_37 : f32 to vector<8x128xf32>
    %52 = arith.cmpf oge, %50, %51 : vector<8x128xf32>
    %cst_38 = arith.constant 0.00999999977 : f32
    %53 = vector.broadcast %cst_38 : f32 to vector<8x128xf32>
    %54 = arith.mulf %53, %50 : vector<8x128xf32>
    %55 = arith.select %52, %50, %54 : vector<8x128xi1>, vector<8x128xf32>
    %56 = arith.truncf %55 : vector<8x128xf32> to vector<8x128xbf16>
    %c0_39 = arith.constant 0 : index
    %c0_40 = arith.constant 0 : index
    %57 = vector.load %arg6[%c0_39, %c0_40] : memref<128x128xbf16, #tpu.memory_space<vmem>>, vector<128x128xbf16>
    %cst_41 = arith.constant dense<0.000000e+00> : vector<8x128xf32>
    %58 = tpu.matmul %56, %57, %cst_41 {dimension_numbers = #tpu.dot_dimension_numbers<[1], [0], [0], [1], [0, 0, 1, 1], [], []>} : vector<8x128xbf16>, vector<128x128xbf16>, vector<8x128xf32> -> vector<8x128xf32>
    %c0_42 = arith.constant 0 : index
    %c0_43 = arith.constant 0 : index
    %59 = vector.load %arg7[%c0_42, %c0_43] : memref<1x128xf32, #tpu.memory_space<vmem>>, vector<1x128xf32>
    %60 = vector.broadcast %59 : vector<1x128xf32> to vector<8x128xf32>
    %61 = arith.addf %58, %60 : vector<8x128xf32>
    %c0_44 = arith.constant 0 : index
    %c0_45 = arith.constant 0 : index
    %62 = vector.load %arg8[%c0_44, %c0_45] : memref<8x128xf32, #tpu.memory_space<vmem>>, vector<8x128xf32>
    tpu.vector_store %arg8[%c0_44, %c0_45], %61 {strides = array<i32>} : memref<8x128xf32, #tpu.memory_space<vmem>>, vector<8x128xf32>,
    return
  }
}

</mosaic_0001>

<bundles_post_ra>
// kernel: single_target_clf.1
= control target key start
LH: loop header
LB: loop body
LE: loop exit
PB: predicated region body
PF: predicated region fallthrough
CT: control target
= control target key end

     0   :  { %13 = vsyncpa [#allocation5], 0  ;;  %s1339_s0 = inlined_call_operand.vmem [shape: s32[4], index: 0, kind: input, shape index: {}]   ;;  %s1340_s1 = inlined_call_operand.hbm [shape: f32[10,4,256], index: 1, kind: input, shape index: {}]   ;;  %s1341_s2 = inlined_call_operand.hbm [shape: bf16[256,256], index: 2, kind: input, shape index: {}]   ;;  %s1342_s3 = inlined_call_operand.vmem [shape: f32[1,256], index: 3, kind: input, shape index: {}]   ;;  %s1343_s4 = inlined_call_operand.hbm [shape: bf16[256,128], index: 4, kind: input, shape index: {}]   ;;  %s1344_s5 = inlined_call_operand.vmem [shape: f32[1,128], index: 5, kind: input, shape index: {}]   ;;  %s1345_s6 = inlined_call_operand.hbm [shape: bf16[128,128], index: 6, kind: input, shape index: {}]   ;;  %s1346_s7 = inlined_call_operand.vmem [shape: f32[1,128], index: 7, kind: input, shape index: {}]   ;;  %s1347_s8 = inlined_call_operand.vmem [shape: f32[8,128], index: 8, kind: output, shape index: {}]  }
   0x1   :  { %14 = vsyncpa [#allocation4], 0 }
   0x2   :  { %15 = vsyncpa [#allocation8], 0 }
   0x3   :  { %16 = vsyncpa [#allocation11], 0  ;;  %s23_s29 = sshll.u32 %s1339_s0, 4  ;;  %s1149_s30 = smov [#allocation7]   ;;  %s24_s29 = int_to_ptr.vmem [resolvable:$true] %s23_s29 }
   0x4   :  { %s44_s9 = sshll.u32 %s1149_s30, 4  ;;  %s45_s9 = int_to_ptr.vmem [resolvable:$true] %s44_s9 }
   0x5   :  { %s1057_s10 = scalar_lea.vmem %s45_s9, 4096  ;;  %p1062_p1 = scmp.lt.s32.totalorder %s45_s9, %s45_s9 }
   0x6   :  { %p1058_p0 = scmp.ne.s32.totalorder %s45_s9, %s1057_s10  ;;  %p1063_p2 = scmp.lt.s32.totalorder %s1057_s10, %s1057_s10 }
   0x8   :  { %p1064_p3 = por %p1063_p2, %p1062_p1 }
   0xa   :  { %p1065_p4 = pnand %p1064_p3, %p1058_p0 }
   0xc   :  { %1068 = shalt.err (!%p1065_p4)
}
   0xd   :  { %s1150_s11 = smov 128   ;;  %s1151_s12 = smov 8  }
   0xe   :  { %50 = dma.hbm_to_vmem [thread:$0]  %s1341_s2, 4096, %s45_s9, [#allocation8], %s1150_s11, %s1150_s11, %s1151_s12  }
   0xf   :  { %s1069_s15 = scalar_lea.vmem %s24_s29, 16  ;;  %p1074_p6 = scmp.lt.s32.totalorder %s24_s29, %s24_s29 }
  0x10   :  { %p1070_p5 = scmp.ne.s32.totalorder %s24_s29, %s1069_s15  ;;  %p1075_p7 = scmp.lt.s32.totalorder %s1069_s15, %s1069_s15 }
  0x12   :  { %p1076_p8 = por %p1075_p7, %p1074_p6 }
  0x14   :  { %p1077_p9 = pnand %p1076_p8, %p1070_p5 }
  0x16   :  { %1080 = shalt.err (!%p1077_p9)
}
  0x17   :  { %s1152_s0 = smov [#allocation3]   ;;  %s1153_s16 = smov [#allocation6]  }
  0x18   :  { %26 = dma.vmem_to_smem %s24_s29, 16, %s1152_s0, [#allocation5]  }
  0x19   :  { %s32_s17 = sshll.u32 %s1153_s16, 4  ;;  %s1154_s18 = smov [#allocation9]   ;;  %s33_s17 = int_to_ptr.vmem [resolvable:$true] %s32_s17 }
  0x1a   :  { %s58_s19 = sshll.u32 %s1154_s18, 4  ;;  %s1089_s20 = scalar_lea.vmem %s33_s17, 1280  ;;  %s59_s19 = int_to_ptr.vmem [resolvable:$true] %s58_s19 }
  0x1b   :  { %p1090_p10 = scmp.ne.s32.totalorder %s33_s17, %s1089_s20  ;;  %p1094_p11 = scmp.lt.s32.totalorder %s33_s17, %s33_s17 }
  0x1c   :  { %p1095_p12 = scmp.lt.s32.totalorder %s1089_s20, %s1089_s20 }
  0x1e   :  { %p1096_p13 = por %p1095_p12, %p1094_p11 }
  0x20   :  { %p1097_p0 = pnand %p1096_p13, %p1090_p10 }
  0x22   :  { %1100 = shalt.err (!%p1097_p0)
}
  0x23   :  { %38 = dma.hbm_to_vmem [thread:$0]  %s1340_s1, 1280, %s33_s17, [#allocation4], %s1150_s11, %s1150_s11, %s1151_s12  }
  0x24   :  { %s1109_s22 = scalar_lea.vmem %s59_s19, 2048  ;;  %p1114_p2 = scmp.lt.s32.totalorder %s59_s19, %s59_s19 }
  0x25   :  { %p1110_p1 = scmp.ne.s32.totalorder %s59_s19, %s1109_s22  ;;  %p1115_p3 = scmp.lt.s32.totalorder %s1109_s22, %s1109_s22 }
  0x27   :  { %p1116_p4 = por %p1115_p3, %p1114_p2 }
  0x29   :  { %p1117_p5 = pnand %p1116_p4, %p1110_p1 }
  0x2b   :  { %1120 = shalt.err (!%p1117_p5)
}
  0x2c   :  { %s1155_s23 = smov 64   ;;  %s1156_s24 = smov 4  }
  0x2d   :  { %64 = dma.hbm_to_vmem [thread:$0]  %s1343_s4, 2048, %s59_s19, [#allocation8], %s1155_s23, %s1155_s23, %s1156_s24  }
  0x2e   :  { %s1157_s27 = smov [#allocation10]  }
  0x2f   :  { %s72_s28 = sshll.u32 %s1157_s27, 4  ;;  %s73_s28 = int_to_ptr.vmem [resolvable:$true] %s72_s28 }
  0x30   :  { %s1129_s29 = scalar_lea.vmem %s73_s28, 1024  ;;  %p1134_p7 = scmp.lt.s32.totalorder %s73_s28, %s73_s28 }
  0x31   :  { %p1130_p6 = scmp.ne.s32.totalorder %s73_s28, %s1129_s29  ;;  %p1135_p8 = scmp.lt.s32.totalorder %s1129_s29, %s1129_s29 }
  0x33   :  { %p1136_p9 = por %p1135_p8, %p1134_p7 }
  0x35   :  { %p1137_p10 = pnand %p1136_p9, %p1130_p6 }
  0x37   :  { %1140 = shalt.err (!%p1137_p10)
}
  0x38   :  { %78 = dma.hbm_to_vmem [thread:$0]  %s1345_s6, 1024, %s73_s28, [#allocation11], %s1155_s23, %s1155_s23, %s1156_s24  }
  0x39   :  { %1141 = dma.done.wait [#allocation5], 16  }
  0x3a   :  { %1142 = vsyncadd [#allocation5], 4294967280 }
  0x3b   :  { %1143 = dma.done.wait [#allocation4], 1280  }
  0x3c   :  { %1144 = vsyncadd [#allocation4], 4294966016 }
  0x3d   :  { %1145 = dma.done.wait [#allocation8], 6144  }
  0x3e   :  { %1146 = vsyncadd [#allocation8], 4294961152 }
  0x3f   :  { %1147 = dma.done.wait [#allocation11], 1024  }
  0x40   :  { %1148 = vsyncadd [#allocation11], 4294966272 }
  0x41   :  { %96 = sfence }
  0x42   :  { %v975_v0 = vld [vmem:[#allocation7 + $0x74] ss:$8 sps:$4 sm:$0xff]   ;;  %v977_v1 = vld [vmem:[#allocation7 + $0x70] ss:$8 sps:$4 sm:$0xff]   ;;  %v1158_v2 = vmov 0   ;;  %s99_s4 = sld [smem:[#allocation3]]  ;;  %v108_v9 = vlaneseq }
  0x43   :  { %98 = vst [vmem:[#allocation2] sm:$0xcc] %v1158_v2  ;;  %466 = vmatprep.subr.bf16.mxu0 %v975_v0  ;;  %v978_v3 = vld [vmem:[#allocation7 + $0x64] ss:$8 sps:$4 sm:$0xff]   ;;  %v980_v4 = vld [vmem:[#allocation7 + $0x60] ss:$8 sps:$4 sm:$0xff]  }
  0x44   :  { %467 = vmatpush1.bf16.msra.mxu0 %v977_v1  ;;  %v981_v5 = vld [vmem:[#allocation7 + $0x54] ss:$8 sps:$4 sm:$0xff]   ;;  %v983_v6 = vld [vmem:[#allocation7 + $0x50] ss:$8 sps:$4 sm:$0xff]   ;;  %v984_v7 = vld [vmem:[#allocation7 + $0x44] ss:$8 sps:$4 sm:$0xff]  }
  0x45   :  { %468 = vmatprep.subr.bf16.mxu0 %v978_v3  ;;  %v986_v8 = vld [vmem:[#allocation7 + $0x40] ss:$8 sps:$4 sm:$0xff]   ;;  %v987_v10 = vld [vmem:[#allocation7 + $0x34] ss:$8 sps:$4 sm:$0xff]   ;;  %v989_v11 = vld [vmem:[#allocation7 + $0x30] ss:$8 sps:$4 sm:$0xff]  }
  0x46   :  { %v109_v12 = vshrl.u32 %v108_v9, 7  ;;  %v990_v13 = vld [vmem:[#allocation7 + $0x24] ss:$8 sps:$4 sm:$0xff]   ;;  %s1221_s10 = sld [smem:[#allocation3 + $0x1]]  ;;  %vm126_vm0 = vcmask 1040384   ;;  %vm129_vm2 = vcmask 1044484  }
  0x47   :  { %vm127_vm1 = vsmask.f32 256  ;;  %v992_v14 = vld [vmem:[#allocation7 + $0x20] ss:$8 sps:$4 sm:$0xff]   ;;  %vm130_vm3 = vsmask.f32 4352 }
  0x48   :  { %469 = vmatpush1.bf16.msra.mxu0 %v980_v4  ;;  %s822_s6 = sadd.s32 4294967295, %s99_s4  ;;  %v993_v15 = vld [vmem:[#allocation7 + $0x14] ss:$8 sps:$4 sm:$0xff]   ;;  %v1223_v16 = vsub.s32 0, %v109_v12  ;;  %v1225_v17 = vsub.s32 1, %v109_v12  ;;  %vm1228_vm4 = vmand %vm126_vm0, %vm127_vm1  ;;  %vm204_vm5 = vcmask 1041409  }
  0x49   :  { %470 = vmatprep.subr.bf16.mxu0 %v981_v5  ;;  %p101_p11 = scmp.gt.s32.totalorder %s822_s6, 0  ;;  %v995_v20 = vld [vmem:[#allocation7 + $0x10] ss:$8 sps:$4 sm:$0xff]   ;;  %vm1235_vm6 = vmand %vm129_vm2, %vm130_vm3  ;;  %s1240_s13 = sld [smem:[#allocation3 + $0x2]]  ;;  %v133_v25 = vld [vmem:[#allocation2] sm:$0x11] }
  0x4a   :  { %v1025_v24 = vld [vmem:[#allocation9 + $0x78] sm:$0xff]   ;;  %vm132_vm7 = vmor %vm1235_vm6, %vm1228_vm4  ;;  %vm167_vm8 = vsmask.f32 7938  ;;  %v996_v27 = vld [vmem:[#allocation7 + $0x4] ss:$8 sps:$4 sm:$0xff]   ;;  %s1246_s14 = sld [smem:[#allocation3 + $0x3]] }
  0x4b   :  { %s1366_s6 = smov (!%p101_p11, %s822_s6), 0  ;;  %v1026_v26 = vld [vmem:[#allocation9 + $0x38] sm:$0xff]   ;;  %vm169_vm9 = vsmask.f32 7954  ;;  %912 = vmatprep.subr.bf16.mxu1 %v1025_v24  ;;  %v998_v29 = vld [vmem:[#allocation7] ss:$8 sps:$4 sm:$0xff]   ;;  %vm1255_vm11 = vmand %vm126_vm0, %vm167_vm8 }
  0x4c   :  { %471 = vmatpush1.bf16.msra.mxu0 %v983_v6  ;;  %s904_s9 = sshll.u32 %s1366_s6, 3  ;;  %s827_s12 = sadd.s32 4294967295, %s1221_s10  ;;  %vm205_vm10 = vsmask.f32 1280  ;;  %913 = vmatpush3.bf16.msra.mxu1 %v1026_v26  ;;  %v1027_v30 = vld [vmem:[#allocation9 + $0x70] sm:$0xff]   ;;  %vm1261_vm13 = vmand %vm129_vm2, %vm169_vm9  ;;  %vm207_vm14 = vcmask 1045509  }
  0x4d   :  { %472 = vmatprep.subr.bf16.mxu0 %v984_v7  ;;  %s105_s11 = scalar_lea.vmem [#allocation6], %s904_s9  ;;  %p138_p12 = scmp.gt.s32.totalorder %s827_s12, 0  ;;  %v999_v31 = vld [vmem:[#allocation7 + $0xf4] ss:$8 sps:$4 sm:$0xff]   ;;  %vm208_vm12 = vsmask.f32 5376  ;;  %914 = vmatprep.subr.bf16.mxu1 %v1027_v30  ;;  %vm171_vm15 = vmor %vm1261_vm13, %vm1255_vm11 }
  0x4e   :  { %v106_v18 = vld [vmem:[%s105_s11] ss:$4 sm:$0x3]  ;;  %v1001_v35 = vld [vmem:[#allocation7 + $0xf0] ss:$8 sps:$4 sm:$0xff]   ;;  %vm1275_vm1 = vmand %vm204_vm5, %vm205_vm10  ;;  %v1159_v30 = vmov 0.0  }
  0x4f   :  { %v111_v21 = vrot.slane %v106_v18, %v1223_v16  ;;  %v115_v22 = vrot.slane %v106_v18, %v1225_v17  ;;  %s1368_s12 = smov (!%p138_p12, %s827_s12), 0  ;;  %s833_s0 = sadd.s32 4294967295, %s1240_s13  ;;  %v1002_v37 = vld [vmem:[#allocation7 + $0xe4] ss:$8 sps:$4 sm:$0xff]   ;;  %vm246_vm0 = vsmask.f32 7942  ;;  %vm1281_vm3 = vmand %vm207_vm14, %vm208_vm12 }
  0x50   :  { %473 = vmatpush1.bf16.msra.mxu0 %v986_v8  ;;  %s906_s15 = sshll.u32 %s1368_s12, 3  ;;  %p177_p13 = scmp.gt.s32.totalorder %s833_s0, 0  ;;  %v1028_v40 = vld [vmem:[#allocation9 + $0x30] sm:$0xff]   ;;  %vm248_vm2 = vsmask.f32 7958  ;;  %v1029_v42 = vld [vmem:[#allocation9 + $0x68] sm:$0xff]   ;;  %vm210_vm4 = vmor %vm1281_vm3, %vm1275_vm1 }
  0x51   :  { %474 = vmatprep.subr.bf16.mxu0 %v987_v10  ;;  %v905_v28 = vpack.c.bf16 %v115_v22, %v111_v21  ;;  %s142_s16 = scalar_lea.vmem [#allocation6], %s906_s15  ;;  %s839_s17 = sadd.s32 4294967295, %s1246_s14  ;;  %915 = vmatpush3.bf16.msra.mxu1 %v1028_v40  ;;  %v1004_v45 = vld [vmem:[#allocation7 + $0xe0] ss:$8 sps:$4 sm:$0xff]   ;;  %v1005_v47 = vld [vmem:[#allocation7 + $0xd4] ss:$8 sps:$4 sm:$0xff]   ;;  %vm1304_vm6 = vmand %vm204_vm5, %vm246_vm0 }
  0x52   :  { %v830_v36 = vld [vmem:[%s142_s16 + $0x1] ss:$4 sm:$0x3]  ;;  %s1370_s0 = smov (!%p177_p13, %s833_s0), 0  ;;  %p1285_p0 = scmp.gt.s32.totalorder %s839_s17, 0  ;;  %916 = vmatprep.subr.bf16.mxu1 %v1029_v42  ;;  %v1031_v50 = vld [vmem:[#allocation9 + $0x60] sm:$0xff]  }
  0x53   :  { %v134_v32 = vsel %vm132_vm7, %v905_v28, %v133_v25  ;;  %v149_v38 = vrot.slane %v830_v36, %v1223_v16  ;;  %v153_v39 = vrot.slane %v830_v36, %v1225_v17  ;;  %s908_s19 = sshll.u32 %s1370_s0, 3  ;;  %v1030_v46 = vld [vmem:[#allocation9 + $0x28] sm:$0xff]   ;;  %v1032_v51 = vld [vmem:[#allocation9 + $0x20] sm:$0xff]   ;;  %v1007_v56 = vld [vmem:[#allocation7 + $0xd0] ss:$8 sps:$4 sm:$0xff]   ;;  %vm1160_vm10 = vmmov 0  }
  0x54   :  { %475 = vmatpush1.bf16.msra.mxu0 %v989_v11  ;;  %135 = vst [vmem:[#allocation2] sm:$0x11] %v134_v32  ;;  %s181_s20 = scalar_lea.vmem [#allocation6], %s908_s19  ;;  %s1372_s17 = smov (!%p1285_p0, %s839_s17), 0  ;;  %v211_v57 = vld [vmem:[#allocation2] sm:$0x22]  ;;  %vm1310_vm7 = vmand %vm207_vm14, %vm248_vm2 }
  0x55   :  { %476 = vmatprep.subr.bf16.mxu0 %v990_v13  ;;  %v907_v43 = vpack.c.bf16 %v153_v39, %v149_v38  ;;  %v836_v52 = vld [vmem:[%s181_s20 + $0x2] ss:$4 sm:$0x3]  ;;  %917 = vmatpush3.bf16.msra.mxu1 %v1030_v46  ;;  %s910_s2 = sshll.u32 %s1372_s17, 3  ;;  %v1033_v58 = vld [vmem:[#allocation9 + $0x58] sm:$0xff]   ;;  %v1035_v4 = vld [vmem:[#allocation9 + $0x50] sm:$0xff]  }
  0x56   :  { %v188_v54 = vrot.slane %v836_v52, %v1223_v16  ;;  %v192_v55 = vrot.slane %v836_v52, %v1225_v17  ;;  %918 = vmatprep.subr.bf16.mxu1 %v1031_v50  ;;  %v1008_v59 = vld [vmem:[#allocation7 + $0xc4] ss:$8 sps:$4 sm:$0xff]   ;;  %s220_s21 = scalar_lea.vmem [#allocation6], %s910_s2  ;;  %v1034_v0 = vld [vmem:[#allocation9 + $0x18] sm:$0xff]   ;;  %v1010_v5 = vld [vmem:[#allocation7 + $0xc0] ss:$8 sps:$4 sm:$0xff]  }
  0x57   :  { %v164_v48 = vshll.u32 %v907_v43, 16  ;;  %v842_v62 = vld [vmem:[%s220_s21 + $0x3] ss:$4 sm:$0x3]  ;;  %v1011_v6 = vld [vmem:[#allocation7 + $0xb4] ss:$8 sps:$4 sm:$0xff]   ;;  %vm250_vm5 = vmor %vm1310_vm7, %vm1304_vm6 }
  0x58   :  { %477 = vmatpush1.bf16.msra.mxu0 %v992_v14  ;;  %v909_v60 = vpack.c.bf16 %v192_v55, %v188_v54  ;;  %v227_v2 = vrot.slane %v842_v62, %v1223_v16  ;;  %v231_v3 = vrot.slane %v842_v62, %v1225_v17  ;;  %v1013_v10 = vld [vmem:[#allocation7 + $0xb0] ss:$8 sps:$4 sm:$0xff]   ;;  %v1014_v11 = vld [vmem:[#allocation7 + $0xa4] ss:$8 sps:$4 sm:$0xff]   ;;  %v1016_v14 = vld [vmem:[#allocation7 + $0xa0] ss:$8 sps:$4 sm:$0xff]  }
  0x59   :  { %478 = vmatprep.subr.bf16.mxu0 %v993_v15  ;;  %919 = vmatpush3.bf16.msra.mxu1 %v1032_v51  ;;  %v1017_v18 = vld [vmem:[#allocation7 + $0x94] ss:$8 sps:$4 sm:$0xff]   ;;  %v1019_v19 = vld [vmem:[#allocation7 + $0x90] ss:$8 sps:$4 sm:$0xff]   ;;  %v1022_v21 = vld [vmem:[#allocation7 + $0x80] ss:$8 sps:$4 sm:$0xff]  }
  0x5a   :  { %v202_v1 = vrot.slane %v909_v60, 7  ;;  %920 = vmatprep.subr.bf16.mxu1 %v1033_v58  ;;  %v911_v8 = vpack.c.bf16 %v231_v3, %v227_v2  ;;  %v1036_v25 = vld [vmem:[#allocation9 + $0x10] sm:$0xff]   ;;  %v1037_v26 = vld [vmem:[#allocation9 + $0x48] sm:$0xff]   ;;  %v1039_v28 = vld [vmem:[#allocation9 + $0x40] sm:$0xff]  }
  0x5b   :  { %v172_v49 = vld [vmem:[#allocation2] sm:$0x11]  ;;  %v1048_v51 = vld [vmem:[#allocation10] sm:$0xff]  }
  0x5c   :  { %479 = vmatpush1.bf16.msra.mxu0 %v995_v20  ;;  %v173_v53 = vsel %vm171_vm15, %v164_v48, %v172_v49  ;;  %v212_v7 = vsel %vm210_vm4, %v202_v1, %v211_v57  ;;  %v242_v9 = vshll.u32 %v911_v8, 16  ;;  %v1020_v20 = vld [vmem:[#allocation7 + $0x84] ss:$8 sps:$4 sm:$0xff]   ;;  %v1045_v48 = vld [vmem:[#allocation10 + $0x18] sm:$0xff]   ;;  %v1046_v49 = vld [vmem:[#allocation10 + $0x10] sm:$0xff]  }
  0x5d   :  { %480 = vmatprep.subr.bf16.mxu0 %v996_v27  ;;  %174 = vst [vmem:[#allocation2] sm:$0x11] %v173_v53  ;;  %213 = vst [vmem:[#allocation2] sm:$0x22] %v212_v7  ;;  %921 = vmatpush3.bf16.msra.mxu1 %v1034_v0  ;;  %v1038_v27 = vld [vmem:[#allocation9 + $0x8] sm:$0xff]  }
  0x5e   :  { %922 = vmatprep.subr.bf16.mxu1 %v1035_v4  ;;  %v244_v12 = vrot.slane %v242_v9, 7  ;;  %v1047_v50 = vld [vmem:[#allocation10 + $0x8] sm:$0xff]  }
  0x5f   :  { %v878_v53 = vld [vmem:[%s1344_s5] ss:$0 sm:$0xff] }
  0x60   :  { %481 = vmatpush1.bf16.msra.mxu0 %v998_v29  ;;  %v1040_v29 = vld [vmem:[#allocation9] sm:$0xff]   ;;  %v895_v62 = vld [vmem:[%s1346_s7] ss:$0 sm:$0xff] }
  0x61   :  { %482 = vmatprep.subr.bf16.mxu0 %v999_v31  ;;  %923 = vmatpush3.bf16.msra.mxu1 %v1036_v25  ;;  %v287_v31 = vld [vmem:[%s1342_s3] sm:$0x3] }
  0x62   :  { %924 = vmatprep.subr.bf16.mxu1 %v1037_v26  ;;  %v292_v32 = vrot.slane %v287_v31, %v1223_v16  ;;  %v296_v33 = vrot.slane %v287_v31, %v1225_v17  ;;  %v1042_v16 = vld [vmem:[#allocation10 + $0x30] sm:$0xff]   ;;  %v1043_v17 = vld [vmem:[#allocation10 + $0x28] sm:$0xff]  }
  0x64   :  { %483 = vmatpush2.bf16.msra.mxu0 %v1001_v35  ;;  %v251_v13 = vld [vmem:[#allocation2] sm:$0x22] }
  0x65   :  { %484 = vmatprep.subr.bf16.mxu0 %v1002_v37  ;;  %v252_v15 = vsel %vm250_vm5, %v244_v12, %v251_v13  ;;  %925 = vmatpush3.bf16.msra.mxu1 %v1038_v27 }
  0x66   :  { %253 = vst [vmem:[#allocation2] sm:$0x22] %v252_v15  ;;  %926 = vmatprep.subr.bf16.mxu1 %v1039_v28 }
  0x68   :  { %485 = vmatpush2.bf16.msra.mxu0 %v1004_v45  ;;  %v1041_v45 = vld [vmem:[#allocation10 + $0x38] sm:$0xff]  }
  0x69   :  { %486 = vmatprep.subr.bf16.mxu0 %v1005_v47  ;;  %927 = vmatpush3.bf16.msra.mxu1 %v1040_v29  ;;  %v1044_v47 = vld [vmem:[#allocation10 + $0x20] sm:$0xff]  }
  0x6a   :  { %943 = vmatprep.subr.bf16.mxu1 %v1159_v30 }
  0x6c   :  { %487 = vmatpush2.bf16.msra.mxu0 %v1007_v56 }
  0x6d   :  { %488 = vmatprep.subr.bf16.mxu0 %v1008_v59  ;;  %v254_v22 = vld [vmem:[#allocation2] sm:$0xff] }
  0x6e   :  { %v845_v23 = vcombine.high %v254_v22, %v254_v22  ;;  %v844_v24 = vcombine.low %v254_v22, %v254_v22 }
  0x70   :  { %489 = vmatpush2.bf16.msra.mxu0 %v1010_v5  ;;  %498 = vmatprep.mubr.bf16.mxu0 %v845_v23 }
  0x71   :  { %490 = vmatprep.subr.bf16.mxu0 %v1011_v6 }
  0x74   :  { %491 = vmatpush2.bf16.msra.mxu0 %v1013_v10 }
  0x75   :  { %492 = vmatprep.subr.bf16.mxu0 %v1014_v11 }
  0x78   :  { %493 = vmatpush2.bf16.msra.mxu0 %v1016_v14 }
  0x79   :  { %494 = vmatprep.subr.bf16.mxu0 %v1017_v18 }
  0x7c   :  { %495 = vmatpush2.bf16.msra.mxu0 %v1019_v19 }
  0x7d   :  { %496 = vmatprep.subr.bf16.mxu0 %v1020_v20 }
  0x80   :  { %497 = vmatpush2.bf16.msra.mxu0 %v1022_v21 }
  0x83   :  { %499 = vmatmul.mubr.bf16.vlgmr.msra.gmra.mxu0 %v844_v24 }
 0x143   :  { %v500_v34 = vpop.f32.mrf.mxu0 }
 0x144   :  { %v501_v35 = vadd.f32 %v500_v34, %v292_v32 }
 0x145   :  { %v502_v36 = vpop.f32.mrf.mxu0 }
 0x146   :  { %vm507_vm8 = vcmp.ge.f32.partialorder %v501_v35, 0.0  ;;  %v509_v37 = vmul.f32 0.01, %v501_v35  ;;  %v503_v38 = vadd.f32 %v502_v36, %v296_v33 }
 0x147   :  { %v504_v39 = vpop.f32.mrf.mxu0 }
 0x148   :  { %vm508_vm9 = vcmp.ge.f32.partialorder %v503_v38, 0.0  ;;  %v510_v40 = vmul.f32 0.01, %v503_v38  ;;  %v511_v42 = vsel %vm507_vm8, %v501_v35, %v509_v37 }
 0x149   :  { %v505_v41 = vpop.f32.mrf.mxu0  ;;  %v513_v46 = vpack.c.bf16 %v511_v42, %v511_v42 }
 0x14a   :  { %v512_v43 = vsel %vm508_vm9, %v503_v38, %v510_v40 }
 0x14b   :  { %v514_v44 = vpack.c.bf16 %v512_v43, %v512_v43 }
 0x14d   :  { %682 = vmatprep.mubr.bf16.mxu1 %v514_v44 }
 0x14e   :  { %683 = vmatmul.mubr.bf16.vlgmr.msra.gmra.mxu1 %v513_v46 }
 0x14f   :  { %944 = vmatpush3.bf16.msra.mxu1 %v1041_v45  ;;  %959 = vmatprep.mubr.msk.bf16.mxu1 %vm1160_vm10, %v1159_v30 }
 0x150   :  { %945 = vmatprep.subr.bf16.mxu1 %v1159_v30 }
 0x153   :  { %946 = vmatpush3.bf16.msra.mxu1 %v1042_v16 }
 0x154   :  { %947 = vmatprep.subr.bf16.mxu1 %v1159_v30 }
 0x157   :  { %948 = vmatpush3.bf16.msra.mxu1 %v1043_v17 }
 0x158   :  { %949 = vmatprep.subr.bf16.mxu1 %v1159_v30 }
 0x15b   :  { %950 = vmatpush3.bf16.msra.mxu1 %v1044_v47 }
 0x15c   :  { %951 = vmatprep.subr.bf16.mxu1 %v1159_v30 }
 0x15f   :  { %952 = vmatpush3.bf16.msra.mxu1 %v1045_v48 }
 0x160   :  { %953 = vmatprep.subr.bf16.mxu1 %v1159_v30 }
 0x163   :  { %954 = vmatpush3.bf16.msra.mxu1 %v1046_v49 }
 0x164   :  { %955 = vmatprep.subr.bf16.mxu1 %v1159_v30 }
 0x167   :  { %956 = vmatpush3.bf16.msra.mxu1 %v1047_v50 }
 0x168   :  { %957 = vmatprep.subr.bf16.mxu1 %v1159_v30 }
 0x16b   :  { %958 = vmatpush3.bf16.msra.mxu1 %v1048_v51 }
 0x20e   :  { %v928_v52 = vpop.f32.mrf.mxu1 }
 0x210   :  { %v929_v54 = vpop.f32.mrf.mxu1 }
 0x211   :  { %v930_v55 = vadd.f32 %v929_v54, %v928_v52 }
 0x212   :  { %v931_v56 = vpop.f32.mrf.mxu1 }
 0x213   :  { %v685_v57 = vadd.f32 %v930_v55, %v878_v53 }
 0x214   :  { %v932_v58 = vpop.f32.mrf.mxu1 }
 0x215   :  { %vm690_vm11 = vcmp.ge.f32.partialorder %v685_v57, 0.0  ;;  %v691_v59 = vmul.f32 0.01, %v685_v57 }
 0x217   :  { %v692_v60 = vsel %vm690_vm11, %v685_v57, %v691_v59 }
 0x218   :  { %v693_v61 = vpack.c.bf16 %v692_v60, %v692_v60 }
 0x21a   :  { %960 = vmatmul.mubr.bf16.vlgmr.msra.gmra.mxu1 %v693_v61 }
 0x2da   :  { %v799_v63 = vpop.f32.mrf.mxu1 }
 0x2db   :  { %v800_v0 = vadd.f32 %v895_v62, %v799_v63 }
 0x2dc   :  { %v961_v1 = vpop.f32.mrf.mxu1 }
 0x2dd   :  { %805 = vst [vmem:[%s1347_s8] sm:$0xff] %v800_v0 }
 0x2de   :  { %v802_v2 = vpop.f32.mrf.mxu1 }
 0x2e0   :  { %v962_v3 = vpop.f32.mrf.mxu1 }
 0x2e1   :  { %810 = vsyncpa [#allocation4], 1 }
 0x2e2   :  { %811 = vsyncpa [#allocation8], 1 }
 0x2e3   :  { %812 = vsyncpa [#allocation11], 1 }
 0x2e4   :  { %813 = vsyncpa [#allocation5], 1 }

</bundles_post_ra>
